<compile_context>
chip_gen: v5e
topology: v5e:2x2
jax: 0.10.0
libtpu: 0.0.40
codegen_flags: <defaults>
</compile_context>

<pallas_src>
import functools

import jax
import jax.numpy as jnp
import numpy as np
from jax.experimental import pallas as pl
from jax.experimental.pallas import tpu as pltpu

EPS = 1e-5          # nn.InstanceNorm2d eps
NEG_SLOPE = 0.01    # nn.LeakyReLU default negative_slope


# ---------------------------------------------------------------------------
# Pallas kernel: one grid program == nb batch images, lane-dense layouts.
# ---------------------------------------------------------------------------
def convblock_kernel(xp_ref, w_ref, gamma_ref, beta_ref, rmap_ref, bmap_ref,
                     out_ref, *, k, dilation, nb, h_out, w_out, cout, relu):
    """Shapes (per program):
      xp_ref   : (nb, Hp_pad, K_pad)      reflection-padded activation, f32,
                                          K_pad = Wp*Cin zero-padded to 128 lanes
      w_ref    : (k, K_pad, Wout*Cout)    per-kernel-row conv weight, bf16
      gamma_ref: (1, Wout*Cout)           InstanceNorm weight, lane-dense tiled
      beta_ref : (1, Wout*Cout)           InstanceNorm bias,   lane-dense tiled
      rmap_ref : (Wout*Cout, Cout)        0/1 map: lane (w,c) -> channel c
      bmap_ref : (Cout, Wout*Cout)        0/1 map: channel c -> lane (w,c)
      out_ref  : (nb, Hout, Wout*Cout)    lane-dense output
    """
    hi = jax.lax.Precision.HIGHEST  # only for the tiny norm-map matmuls
    wc = w_out * cout

    xa = xp_ref[...]                                        # (nb, Hp_pad, K_pad) f32
    if relu:
        # LeakyReLU commutes with reflection padding -> apply on padded rows (f32 VPU).
        xa = jnp.where(xa > 0, xa, NEG_SLOPE * xa)
    xa = xa.astype(w_ref.dtype)                             # bf16 operands for the MXU

    # Conv2d as k chained row-matmuls; kw taps + input channels folded into K,
    # the nb images folded into M (nb*Hout rows per MXU push), f32 accumulation.
    def tap(kh):
        r0 = kh * dilation
        lhs = xa[:, r0:r0 + h_out, :].reshape(nb * h_out, -1)
        return jnp.dot(lhs, w_ref[kh], preferred_element_type=jnp.float32)

    y = tap(0)
    for kh in range(1, k):                                  # chained accumulate
        y = y + tap(kh)                                     # (nb*Hout, Wout*Cout)
    y3 = y.reshape(nb, h_out, wc)

    # InstanceNorm2d(affine=True): fused single-pass per-image statistics.
    hw = h_out * w_out
    row = jnp.concatenate([jnp.sum(y3, axis=1),
                           jnp.sum(y3 * y3, axis=1)], axis=0)        # (2*nb, wc)
    s = jnp.dot(row, rmap_ref[...], preferred_element_type=jnp.float32,
                precision=hi)                                         # (2*nb, Cout)
    mean = s[:nb] * (1.0 / hw)                                        # (nb, Cout)
    var = jnp.maximum(s[nb:] * (1.0 / hw) - mean * mean, 0.0)         # biased var
    inv = jax.lax.rsqrt(var + EPS)
    mi = jnp.concatenate([mean, inv], axis=0)                         # (2*nb, Cout)
    mi_l = jnp.dot(mi, bmap_ref[...], preferred_element_type=jnp.float32,
                   precision=hi)                                      # (2*nb, wc)
    mean_l = mi_l[:nb][:, None, :]                                    # (nb, 1, wc)
    scale_l = mi_l[nb:][:, None, :] * gamma_ref[...]                  # inv_std*gamma
    shift_l = beta_ref[...] - mean_l * scale_l

    out_ref[...] = (y3 * scale_l + shift_l).astype(out_ref.dtype)


# ---------------------------------------------------------------------------
# Wrapper-side glue (layout plumbing / weight expansion, traced once under jit)
# ---------------------------------------------------------------------------
def _conv_row_weight(w, groups, wp, w_out, dilation, k_pad):
    """OIHW grouped conv weight (Cout, Cin/G, k, k) -> (k, K_pad, Wout*Cout).

    B[kh, j*Cin + ci, w*Cout + co] = w[co, ci_local, kh, kw] if j == w + kw*dilation
    and ci, co are in the same group, else 0 (stride = 1); K dim zero-padded to k_pad.
    """
    cout, cin_pg, k, _ = w.shape
    cin = cin_pg * groups
    cout_pg = cout // groups
    w_t = jnp.transpose(w, (2, 3, 1, 0)).reshape(k, k, cin_pg, groups, cout_pg)
    s_sel = (jnp.arange(wp)[None, :, None]
             == jnp.arange(w_out)[None, None, :]
             + jnp.arange(k)[:, None, None] * dilation).astype(w.dtype)
    eye_g = jnp.eye(groups, dtype=w.dtype)                    # group-diagonal gate
    b = jnp.einsum("vjw,gf,hvifo->hjgiwfo", s_sel, eye_g, w_t)
    b = b.reshape(k, wp * cin, w_out * cout)
    if k_pad > wp * cin:
        b = jnp.pad(b, ((0, 0), (0, k_pad - wp * cin), (0, 0)))
    return b


def _pick_nb(n, nb_max=8):
    """Images per grid program: keep >= 2 grid steps (v7x has 2 TCs), nb | n."""
    target = min(nb_max, max(1, n // 2))
    for nb in range(target, 0, -1):
        if n % nb == 0:
            return nb
    return 1


@functools.partial(jax.jit, static_argnames=("kernel_size", "padding", "stride",
                                              "dilation", "groups", "relu"))
def convblock_pallas(x, params, *, kernel_size, padding=0, stride=1, dilation=1,
                     groups=1, relu=True):
    if stride != 1:
        # TODO(synk): stride > 1 needs strided row slices; ConvBlock default is stride=1.
        raise NotImplementedError("stride > 1 not implemented")

    n, cin, h, w = x.shape
    k = kernel_size
    cout = params["in_gamma"].shape[0]
    p = padding
    if p >= h or p >= w:
        raise ValueError("ReflectionPad2d requires padding < spatial size")
    hp, wp = h + 2 * p, w + 2 * p
    h_out = hp - dilation * (k - 1)
    w_out = wp - dilation * (k - 1)
    wc = w_out * cout

    # NCHW -> reflection-padded, lane-dense (N, Hp_pad, K_pad)   (== nn.ReflectionPad2d)
    k_dim = wp * cin
    k_pad = ((k_dim + 127) // 128) * 128        # pad contraction dim to 128 lanes
    hp_pad = ((hp + 7) // 8) * 8                # pad rows to sublane multiple
    x_nhwc = jnp.transpose(x, (0, 2, 3, 1)).astype(jnp.float32)
    if p > 0:
        x_nhwc = jnp.pad(x_nhwc, ((0, 0), (p, p), (p, p), (0, 0)), mode="reflect")
    xp = x_nhwc.reshape(n, hp, k_dim)
    xp = jnp.pad(xp, ((0, 0), (0, hp_pad - hp), (0, k_pad - k_dim)))

    # Parameter prep.  Conv bias (if any) is dropped: InstanceNorm is always applied
    # in this module, and it exactly cancels a per-channel additive constant.
    w_row = _conv_row_weight(params["conv_w"].astype(jnp.float32), groups, wp, w_out,
                             dilation, k_pad).astype(jnp.bfloat16)
    w_bytes = w_row.size * 2
    if w_bytes > (32 << 20):
        # TODO(synk): above this size switch to a classic im2col / H-strip path
        # ((Hout_tile*Wout, k*k*Cin) @ (k*k*Cin, Cout)); the expanded row weight does
        # Wp/k x redundant MACs and overflows VMEM (64 MiB on v7x) for real conv sizes.
        raise NotImplementedError("expanded row weight exceeds the VMEM budget")

    gamma_l = jnp.tile(params["in_gamma"].astype(jnp.float32), w_out).reshape(1, wc)
    beta_l = jnp.tile(params["in_beta"].astype(jnp.float32), w_out).reshape(1, wc)
    bmap = jnp.tile(jnp.eye(cout, dtype=jnp.float32), (1, w_out))  # (Cout, Wout*Cout)
    rmap = bmap.T                                                  # (Wout*Cout, Cout)

    nb = _pick_nb(n)
    grid = n // nb

    # VMEM budget (double-buffered blocks + headroom) and advisory cost estimate.
    block_bytes = (nb * hp_pad * k_pad * 4 + w_bytes + nb * h_out * wc * 4
                   + 2 * wc * 4 + 2 * wc * cout * 4)
    vmem_limit = int(max(32 << 20, min(2 * block_bytes + (8 << 20), 112 << 20)))
    cost = pl.CostEstimate(
        flops=2 * n * k * h_out * k_pad * wc + 6 * n * h_out * wc,
        transcendentals=n * cout,
        bytes_accessed=xp.size * 4 + w_row.size * 2 + n * h_out * wc * 4)

    kern = functools.partial(convblock_kernel, k=k, dilation=dilation, nb=nb,
                             h_out=h_out, w_out=w_out, cout=cout, relu=relu)
    out = pl.pallas_call(
        kern,
        out_shape=jax.ShapeDtypeStruct((n, h_out, wc), x.dtype),
        grid=(grid,),
        in_specs=[
            pl.BlockSpec((nb, hp_pad, k_pad), lambda i: (i, 0, 0)),
            pl.BlockSpec((k, k_pad, wc), lambda i: (0, 0, 0)),
            pl.BlockSpec((1, wc), lambda i: (0, 0)),
            pl.BlockSpec((1, wc), lambda i: (0, 0)),
            pl.BlockSpec((wc, cout), lambda i: (0, 0)),
            pl.BlockSpec((cout, wc), lambda i: (0, 0)),
        ],
        out_specs=pl.BlockSpec((nb, h_out, wc), lambda i: (i, 0, 0)),
        compiler_params=pltpu.CompilerParams(
            dimension_semantics=("parallel",), vmem_limit_bytes=vmem_limit),
        cost_estimate=cost,
    )(xp, w_row, gamma_l, beta_l, rmap, bmap)

    # lane-dense (N, Hout, Wout*Cout) -> NCHW
    return jnp.transpose(out.reshape(n, h_out, w_out, cout), (0, 3, 1, 2))


# ---------------------------------------------------------------------------
# Pure-JAX reference (mirrors the PyTorch module) for the correctness check
# ---------------------------------------------------------------------------
def convblock_ref(x, params, *, kernel_size, padding=0, stride=1, dilation=1,
                  groups=1, relu=True):
    del kernel_size
    y = x
    if relu:
        y = jnp.where(y > 0, y, NEG_SLOPE * y)                 # LeakyReLU(0.01)
    if padding > 0:
        y = jnp.pad(y, ((0, 0), (0, 0), (padding, padding), (padding, padding)),
                    mode="reflect")                            # ReflectionPad2d
    y = jax.lax.conv_general_dilated(
        y, params["conv_w"], window_strides=(stride, stride), padding="VALID",
        rhs_dilation=(dilation, dilation),
        dimension_numbers=("NCHW", "OIHW", "NCHW"),
        feature_group_count=groups,
        precision=jax.lax.Precision.HIGHEST)
    if params.get("conv_b") is not None:
        y = y + params["conv_b"][None, :, None, None]
    mean = y.mean(axis=(2, 3), keepdims=True)                  # InstanceNorm2d
    var = ((y - mean) ** 2).mean(axis=(2, 3), keepdims=True)
    y = (y - mean) * jax.lax.rsqrt(var + EPS)
    return (y * params["in_gamma"][None, :, None, None]
            + params["in_beta"][None, :, None, None])


if __name__ == "__main__":
    key = jax.random.PRNGKey(0)
    # ConvBlock(in_planes=4, out_planes=8, kernel_size=3, padding=1) with module
    # defaults: stride=1, dilation=1, groups=1, relu=True, bias=False.
    N, CIN, H, W = 2, 4, 16, 16
    COUT, K, PADDING, GROUPS = 8, 3, 1, 1

    k_x, k_w, k_g, k_b = jax.random.split(key, 4)
    x = jax.random.normal(k_x, (N, CIN, H, W), jnp.float32)
    params = dict(
        conv_w=(1.0 / np.sqrt(K * K * CIN // GROUPS))
               * jax.random.normal(k_w, (COUT, CIN // GROUPS, K, K), jnp.float32),
        conv_b=None,                                          # Conv2d(bias=False)
        in_gamma=1.0 + 0.1 * jax.random.normal(k_g, (COUT,), jnp.float32),
        in_beta=0.1 * jax.random.normal(k_b, (COUT,), jnp.float32),
    )

    out = convblock_pallas(x, params, kernel_size=K, padding=PADDING,
                           stride=1, dilation=1, groups=GROUPS, relu=True)
    out = jax.block_until_ready(out)

    ref = convblock_ref(x, params, kernel_size=K, padding=PADDING,
                        stride=1, dilation=1, groups=GROUPS, relu=True)
    # Conv matmuls run with bf16 operands (f32 accumulate); the reference uses
    # Precision.HIGHEST, hence the loosened tolerance.
    np.testing.assert_allclose(np.asarray(out), np.asarray(ref), rtol=2e-2, atol=2e-2)
    print("KERNEL_OK")
</pallas_src>

<mosaic_0001>
module attributes {stable_mosaic.version = 11 : i64} {
  func.func @convblock_kernel(%arg0: i32, %arg1: memref<1x24x128xf32, #tpu.memory_space<vmem>>, %arg2: memref<3x128x128xbf16, #tpu.memory_space<vmem>>, %arg3: memref<1x128xf32, #tpu.memory_space<vmem>>, %arg4: memref<1x128xf32, #tpu.memory_space<vmem>>, %arg5: memref<128x8xf32, #tpu.memory_space<vmem>>, %arg6: memref<8x128xf32, #tpu.memory_space<vmem>>, %arg7: memref<1x16x128xf32, #tpu.memory_space<vmem>>) attributes {dimension_semantics = [#tpu.dimension_semantics<parallel>], iteration_bounds = array<i64: 2>, scalar_prefetch = 0 : i64, scratch_operands = 0 : i64, tpu.core_type = #tpu.core_type<tc>, window_params = [{transform_indices = @transform_0, window_bounds = array<i64: 1, 24, 128>}, {pipeline_mode = #tpu.pipeline_mode<synchronous>, transform_indices = @transform_1, window_bounds = array<i64: 3, 128, 128>}, {pipeline_mode = #tpu.pipeline_mode<synchronous>, transform_indices = @transform_2, window_bounds = array<i64: 1, 128>}, {pipeline_mode = #tpu.pipeline_mode<synchronous>, transform_indices = @transform_3, window_bounds = array<i64: 1, 128>}, {pipeline_mode = #tpu.pipeline_mode<synchronous>, transform_indices = @transform_4, window_bounds = array<i64: 128, 8>}, {pipeline_mode = #tpu.pipeline_mode<synchronous>, transform_indices = @transform_5, window_bounds = array<i64: 8, 128>}, {transform_indices = @transform_6, window_bounds = array<i64: 1, 16, 128>}]} {
    %c0 = arith.constant 0 : index
    %c0_0 = arith.constant 0 : index
    %c0_1 = arith.constant 0 : index
    %0 = vector.load %arg1[%c0, %c0_0, %c0_1] : memref<1x24x128xf32, #tpu.memory_space<vmem>>, vector<1x24x128xf32>
    %cst = arith.constant 0.000000e+00 : f32
    %1 = vector.broadcast %cst : f32 to vector<1x24x128xf32>
    %2 = arith.cmpf ogt, %0, %1 : vector<1x24x128xf32>
    %cst_2 = arith.constant 0.00999999977 : f32
    %3 = vector.broadcast %cst_2 : f32 to vector<1x24x128xf32>
    %4 = arith.mulf %3, %0 : vector<1x24x128xf32>
    %5 = arith.select %2, %0, %4 : vector<1x24x128xi1>, vector<1x24x128xf32>
    %6 = arith.truncf %5 : vector<1x24x128xf32> to vector<1x24x128xbf16>
    %7 = vector.extract_strided_slice %6 {offsets = [0, 0, 0], sizes = [1, 16, 128], strides = [1, 1, 1]} : vector<1x24x128xbf16> to vector<1x16x128xbf16>
    %8 = vector.shape_cast %7 : vector<1x16x128xbf16> to vector<16x128xbf16>
    %c0_3 = arith.constant 0 : index
    %c0_4 = arith.constant 0 : index
    %c0_5 = arith.constant 0 : index
    %9 = vector.load %arg2[%c0_3, %c0_4, %c0_5] : memref<3x128x128xbf16, #tpu.memory_space<vmem>>, vector<1x128x128xbf16>
    %10 = vector.shape_cast %9 : vector<1x128x128xbf16> to vector<128x128xbf16>
    %cst_6 = arith.constant dense<0.000000e+00> : vector<16x128xf32>
    %11 = tpu.matmul %8, %10, %cst_6 {dimension_numbers = #tpu.dot_dimension_numbers<[1], [0], [0], [1], [0, 0, 1, 1], [], []>} : vector<16x128xbf16>, vector<128x128xbf16>, vector<16x128xf32> -> vector<16x128xf32>
    %12 = vector.extract_strided_slice %6 {offsets = [0, 1, 0], sizes = [1, 16, 128], strides = [1, 1, 1]} : vector<1x24x128xbf16> to vector<1x16x128xbf16>
    %13 = vector.shape_cast %12 : vector<1x16x128xbf16> to vector<16x128xbf16>
    %c1 = arith.constant 1 : index
    %c0_7 = arith.constant 0 : index
    %c0_8 = arith.constant 0 : index
    %14 = vector.load %arg2[%c1, %c0_7, %c0_8] : memref<3x128x128xbf16, #tpu.memory_space<vmem>>, vector<1x128x128xbf16>
    %15 = vector.shape_cast %14 : vector<1x128x128xbf16> to vector<128x128xbf16>
    %cst_9 = arith.constant dense<0.000000e+00> : vector<16x128xf32>
    %16 = tpu.matmul %13, %15, %cst_9 {dimension_numbers = #tpu.dot_dimension_numbers<[1], [0], [0], [1], [0, 0, 1, 1], [], []>} : vector<16x128xbf16>, vector<128x128xbf16>, vector<16x128xf32> -> vector<16x128xf32>
    %17 = arith.addf %11, %16 : vector<16x128xf32>
    %18 = vector.extract_strided_slice %6 {offsets = [0, 2, 0], sizes = [1, 16, 128], strides = [1, 1, 1]} : vector<1x24x128xbf16> to vector<1x16x128xbf16>
    %19 = vector.shape_cast %18 : vector<1x16x128xbf16> to vector<16x128xbf16>
    %c2 = arith.constant 2 : index
    %c0_10 = arith.constant 0 : index
    %c0_11 = arith.constant 0 : index
    %20 = vector.load %arg2[%c2, %c0_10, %c0_11] : memref<3x128x128xbf16, #tpu.memory_space<vmem>>, vector<1x128x128xbf16>
    %21 = vector.shape_cast %20 : vector<1x128x128xbf16> to vector<128x128xbf16>
    %cst_12 = arith.constant dense<0.000000e+00> : vector<16x128xf32>
    %22 = tpu.matmul %19, %21, %cst_12 {dimension_numbers = #tpu.dot_dimension_numbers<[1], [0], [0], [1], [0, 0, 1, 1], [], []>} : vector<16x128xbf16>, vector<128x128xbf16>, vector<16x128xf32> -> vector<16x128xf32>
    %23 = arith.addf %17, %22 : vector<16x128xf32>
    %24 = vector.shape_cast %23 : vector<16x128xf32> to vector<1x16x128xf32>
    %cst_13 = arith.constant dense<0.000000e+00> : vector<1x128xf32>
    %25 = vector.multi_reduction <add>, %24, %cst_13 [1] : vector<1x16x128xf32> to vector<1x128xf32>
    %26 = arith.mulf %24, %24 : vector<1x16x128xf32>
    %cst_14 = arith.constant dense<0.000000e+00> : vector<1x128xf32>
    %27 = vector.multi_reduction <add>, %26, %cst_14 [1] : vector<1x16x128xf32> to vector<1x128xf32>
    %28 = tpu.concatenate %25, %27 in 0 : vector<1x128xf32>, vector<1x128xf32> -> vector<2x128xf32>
    %c0_15 = arith.constant 0 : index
    %c0_16 = arith.constant 0 : index
    %29 = vector.load %arg5[%c0_15, %c0_16] : memref<128x8xf32, #tpu.memory_space<vmem>>, vector<128x8xf32>
    %cst_17 = arith.constant dense<0.000000e+00> : vector<2x8xf32>
    %30 = tpu.matmul %28, %29, %cst_17 {dimension_numbers = #tpu.dot_dimension_numbers<[1], [0], [0], [1], [0, 0, 1, 1], [], []>, precision = #tpu.contract_precision<fp32>} : vector<2x128xf32>, vector<128x8xf32>, vector<2x8xf32> -> vector<2x8xf32>
    %31 = vector.extract_strided_slice %30 {offsets = [0, 0], sizes = [1, 8], strides = [1, 1]} : vector<2x8xf32> to vector<1x8xf32>
    %cst_18 = arith.constant 3.906250e-03 : f32
    %32 = vector.broadcast %cst_18 : f32 to vector<1x8xf32>
    %33 = arith.mulf %31, %32 : vector<1x8xf32>
    %34 = vector.extract_strided_slice %30 {offsets = [1, 0], sizes = [1, 8], strides = [1, 1]} : vector<2x8xf32> to vector<1x8xf32>
    %cst_19 = arith.constant 3.906250e-03 : f32
    %35 = vector.broadcast %cst_19 : f32 to vector<1x8xf32>
    %36 = arith.mulf %34, %35 : vector<1x8xf32>
    %37 = arith.mulf %33, %33 : vector<1x8xf32>
    %38 = arith.subf %36, %37 : vector<1x8xf32>
    %cst_20 = arith.constant 0.000000e+00 : f32
    %39 = vector.broadcast %cst_20 : f32 to vector<1x8xf32>
    %40 = arith.maximumf %38, %39 : vector<1x8xf32>
    %cst_21 = arith.constant 9.99999974E-6 : f32
    %41 = vector.broadcast %cst_21 : f32 to vector<1x8xf32>
    %42 = arith.addf %40, %41 : vector<1x8xf32>
    %43 = math.rsqrt %42 : vector<1x8xf32>
    %44 = tpu.concatenate %33, %43 in 0 : vector<1x8xf32>, vector<1x8xf32> -> vector<2x8xf32>
    %c0_22 = arith.constant 0 : index
    %c0_23 = arith.constant 0 : index
    %45 = vector.load %arg6[%c0_22, %c0_23] : memref<8x128xf32, #tpu.memory_space<vmem>>, vector<8x128xf32>
    %cst_24 = arith.constant dense<0.000000e+00> : vector<2x128xf32>
    %46 = tpu.matmul %44, %45, %cst_24 {dimension_numbers = #tpu.dot_dimension_numbers<[1], [0], [0], [1], [0, 0, 1, 1], [], []>, precision = #tpu.contract_precision<fp32>} : vector<2x8xf32>, vector<8x128xf32>, vector<2x128xf32> -> vector<2x128xf32>
    %47 = vector.extract_strided_slice %46 {offsets = [0, 0], sizes = [1, 128], strides = [1, 1]} : vector<2x128xf32> to vector<1x128xf32>
    %48 = vector.shape_cast %47 : vector<1x128xf32> to vector<1x1x128xf32>
    %49 = vector.extract_strided_slice %46 {offsets = [1, 0], sizes = [1, 128], strides = [1, 1]} : vector<2x128xf32> to vector<1x128xf32>
    %50 = vector.shape_cast %49 : vector<1x128xf32> to vector<1x1x128xf32>
    %c0_25 = arith.constant 0 : index
    %c0_26 = arith.constant 0 : index
    %51 = vector.load %arg3[%c0_25, %c0_26] : memref<1x128xf32, #tpu.memory_space<vmem>>, vector<1x128xf32>
    %52 = vector.shape_cast %51 : vector<1x128xf32> to vector<1x1x128xf32>
    %53 = arith.mulf %50, %52 : vector<1x1x128xf32>
    %c0_27 = arith.constant 0 : index
    %c0_28 = arith.constant 0 : index
    %54 = vector.load %arg4[%c0_27, %c0_28] : memref<1x128xf32, #tpu.memory_space<vmem>>, vector<1x128xf32>
    %55 = arith.mulf %48, %53 : vector<1x1x128xf32>
    %56 = vector.shape_cast %54 : vector<1x128xf32> to vector<1x1x128xf32>
    %57 = arith.subf %56, %55 : vector<1x1x128xf32>
    %58 = vector.broadcast %53 : vector<1x1x128xf32> to vector<1x16x128xf32>
    %59 = arith.mulf %24, %58 : vector<1x16x128xf32>
    %60 = vector.broadcast %57 : vector<1x1x128xf32> to vector<1x16x128xf32>
    %61 = arith.addf %59, %60 : vector<1x16x128xf32>
    %c0_29 = arith.constant 0 : index
    %c0_30 = arith.constant 0 : index
    %c0_31 = arith.constant 0 : index
    %62 = vector.load %arg7[%c0_29, %c0_30, %c0_31] : memref<1x16x128xf32, #tpu.memory_space<vmem>>, vector<1x16x128xf32>
    tpu.vector_store %arg7[%c0_29, %c0_30, %c0_31], %61 {strides = array<i32>} : memref<1x16x128xf32, #tpu.memory_space<vmem>>, vector<1x16x128xf32>,
    return
  }
  func.func @transform_0(%arg0: i32) -> (i32, i32, i32) {
    %c0_i32 = arith.constant 0 : i32
    %c0_i32_0 = arith.constant 0 : i32
    %c0_i32_1 = arith.constant 0 : i32
    return %arg0, %c0_i32, %c0_i32_0 : i32, i32, i32
  }
  func.func @transform_1(%arg0: i32) -> (i32, i32, i32) {
    %c0_i32 = arith.constant 0 : i32
    %c0_i32_0 = arith.constant 0 : i32
    %c0_i32_1 = arith.constant 0 : i32
    %c0_i32_2 = arith.constant 0 : i32
    return %c0_i32, %c0_i32_0, %c0_i32_1 : i32, i32, i32
  }
  func.func @transform_2(%arg0: i32) -> (i32, i32) {
    %c0_i32 = arith.constant 0 : i32
    %c0_i32_0 = arith.constant 0 : i32
    %c0_i32_1 = arith.constant 0 : i32
    return %c0_i32, %c0_i32_0 : i32, i32
  }
  func.func @transform_3(%arg0: i32) -> (i32, i32) {
    %c0_i32 = arith.constant 0 : i32
    %c0_i32_0 = arith.constant 0 : i32
    %c0_i32_1 = arith.constant 0 : i32
    return %c0_i32, %c0_i32_0 : i32, i32
  }
  func.func @transform_4(%arg0: i32) -> (i32, i32) {
    %c0_i32 = arith.constant 0 : i32
    %c0_i32_0 = arith.constant 0 : i32
    %c0_i32_1 = arith.constant 0 : i32
    return %c0_i32, %c0_i32_0 : i32, i32
  }
  func.func @transform_5(%arg0: i32) -> (i32, i32) {
    %c0_i32 = arith.constant 0 : i32
    %c0_i32_0 = arith.constant 0 : i32
    %c0_i32_1 = arith.constant 0 : i32
    return %c0_i32, %c0_i32_0 : i32, i32
  }
  func.func @transform_6(%arg0: i32) -> (i32, i32, i32) {
    %c0_i32 = arith.constant 0 : i32
    %c0_i32_0 = arith.constant 0 : i32
    %c0_i32_1 = arith.constant 0 : i32
    return %arg0, %c0_i32, %c0_i32_0 : i32, i32, i32
  }
}

</mosaic_0001>

<bundles_post_ra>
// kernel: tile.18
= control target key start
LH: loop header
LB: loop body
LE: loop exit
PB: predicated region body
PF: predicated region fallthrough
CT: control target
= control target key end

     0   :  { %s28_s0 = inlined_call_operand.vmem [shape: f32[8], index: 0, kind: input, shape index: {}]   ;;  %s29_s1 = inlined_call_operand.vmem [shape: f32[16,8], index: 1, kind: output, shape index: {}]  }
   0x1   :  { %v4_v0 = vld [vmem:[%s28_s0] ss:$0 sm:$0xff] }
   0x2   :  { %5 = vst [vmem:[%s29_s1] sm:$0xff] %v4_v0 }
   0x3   :  { %8 = vst [vmem:[%s29_s1 + $0x8] sm:$0xff] %v4_v0 }

// kernel: tile.19
= control target key start
LH: loop header
LB: loop body
LE: loop exit
PB: predicated region body
PF: predicated region fallthrough
CT: control target
= control target key end

     0   :  { %s131_s10 = smov 120   ;;  %s132_s11 = smov 104   ;;  %vm3_vm0 = vcmask 64512   ;;  %vm9_vm1 = vcmask 1048512   ;;  %vm15_vm2 = vcmask 982912   ;;  %vm21_vm3 = vcmask 917312   ;;  %s207_s0 = inlined_call_operand.vmem [shape: f32[16,8], index: 0, kind: input, shape index: {}]   ;;  %s208_s1 = inlined_call_operand.vmem [shape: f32[1,128], index: 1, kind: output, shape index: {}]  }
   0x1   :  { %v101_v0 = vld [vmem:[%s207_s0 + $0xf] sm:$0x1]   ;;  %v103_v1 = vld [vmem:[%s207_s0 + $0xd] sm:$0x1]   ;;  %v105_v2 = vld [vmem:[%s207_s0 + $0xb] sm:$0x1]  }
   0x2   :  { %7 = vrot.lane.b32.xlu0 %v101_v0, %s131_s10  ;;  %19 = vrot.lane.b32.xlu1 %v103_v1, %s132_s11  ;;  %s133_s14 = smov 88   ;;  %v102_v3 = vld [vmem:[%s207_s0 + $0xe] sm:$0x1]   ;;  %v104_v4 = vld [vmem:[%s207_s0 + $0xc] sm:$0x1]   ;;  %s134_s19 = smov 112  }
   0x3   :  { %31 = vrot.lane.b32.xlu2 %v105_v2, %s133_s14  ;;  %s135_s20 = smov 96   ;;  %v106_v5 = vld [vmem:[%s207_s0 + $0xa] sm:$0x1]   ;;  %s136_s23 = smov 80   ;;  %v107_v6 = vld [vmem:[%s207_s0 + $0x9] sm:$0x1]  }
   0x4   :  { %v108_v7 = vld [vmem:[%s207_s0 + $0x8] sm:$0x1]   ;;  %s137_s28 = smov 72   ;;  %s138_s29 = smov 64   ;;  %v109_v8 = vld [vmem:[%s207_s0 + $0x7] sm:$0x1]  }
   0x5   :  { %s139_s3 = smov 56   ;;  %v110_v9 = vld [vmem:[%s207_s0 + $0x6] sm:$0x1]   ;;  %v111_v10 = vld [vmem:[%s207_s0 + $0x5] sm:$0x1]   ;;  %s140_s8 = smov 48  }
   0x6   :  { %s141_s9 = smov 40   ;;  %v112_v11 = vld [vmem:[%s207_s0 + $0x4] sm:$0x1]   ;;  %s142_s12 = smov 32   ;;  %v113_v12 = vld [vmem:[%s207_s0 + $0x3] sm:$0x1]  }
   0x7   :  { %v114_v13 = vld [vmem:[%s207_s0 + $0x2] sm:$0x1]   ;;  %s143_s17 = smov 24   ;;  %s144_s18 = smov 16   ;;  %v115_v14 = vld [vmem:[%s207_s0 + $0x1] sm:$0x1]  }
   0x8   :  { %s145_s21 = smov 8   ;;  %v2_v15 = vld [vmem:[%s207_s0] sm:$0x1]   ;;  %vm27_vm4 = vcmask 851712   ;;  %vm33_vm5 = vcmask 786112   ;;  %vm39_vm6 = vcmask 720512  }
   0x9   :  { %4 = vst.msk [vmem:[#allocation0] sm:$0x1] %vm3_vm0, %v2_v15   ;;  %vm45_vm7 = vcmask 654912   ;;  %vm51_vm8 = vcmask 589312   ;;  %vm57_vm9 = vcmask 523712   ;;  %vm63_vm10 = vcmask 458112  }
   0xa   :  { %13 = vrot.lane.b32.xlu0 %v102_v3, %s134_s19  ;;  %25 = vrot.lane.b32.xlu1 %v104_v4, %s135_s20  ;;  %vm69_vm11 = vcmask 392512   ;;  %vm75_vm12 = vcmask 326912   ;;  %vm81_vm13 = vcmask 261312   ;;  %vm87_vm14 = vcmask 195712  }
   0xb   :  { %37 = vrot.lane.b32.xlu2 %v106_v5, %s136_s23  ;;  %vm93_vm15 = vcmask 130112  }
  0x12   :  { %43 = vrot.lane.b32.xlu0 %v107_v6, %s137_s28  ;;  %49 = vrot.lane.b32.xlu1 %v108_v7, %s138_s29 }
  0x13   :  { %55 = vrot.lane.b32.xlu2 %v109_v8, %s139_s3 }
  0x1a   :  { %61 = vrot.lane.b32.xlu0 %v110_v9, %s140_s8  ;;  %67 = vrot.lane.b32.xlu1 %v111_v10, %s141_s9 }
  0x1b   :  { %73 = vrot.lane.b32.xlu2 %v112_v11, %s142_s12 }
  0x22   :  { %79 = vrot.lane.b32.xlu0 %v113_v12, %s143_s17  ;;  %85 = vrot.lane.b32.xlu1 %v114_v13, %s144_s18 }
  0x23   :  { %91 = vrot.lane.b32.xlu2 %v115_v14, %s145_s21 }
  0x5d   :  { %v32_v16 = vpop.permute.xlu2 %31  }
  0x65   :  { %v38_v17 = vpop.permute.xlu2 %37  }
  0x6d   :  { %v56_v18 = vpop.permute.xlu2 %55  }
  0x74   :  { %v8_v19 = vpop.permute.xlu0 %7   ;;  %v20_v20 = vpop.permute.xlu1 %19  }
  0x75   :  { %10 = vst.msk [vmem:[#allocation0] sm:$0x1] %vm9_vm1, %v8_v19   ;;  %v74_v21 = vpop.permute.xlu2 %73  }
  0x7c   :  { %v14_v22 = vpop.permute.xlu0 %13   ;;  %v26_v23 = vpop.permute.xlu1 %25  }
  0x7d   :  { %16 = vst.msk [vmem:[#allocation0] sm:$0x1] %vm15_vm2, %v14_v22   ;;  %v92_v24 = vpop.permute.xlu2 %91  }
  0x7e   :  { %22 = vst.msk [vmem:[#allocation0] sm:$0x1] %vm21_vm3, %v20_v20  }
  0x7f   :  { %28 = vst.msk [vmem:[#allocation0] sm:$0x1] %vm27_vm4, %v26_v23  }
  0x80   :  { %34 = vst.msk [vmem:[#allocation0] sm:$0x1] %vm33_vm5, %v32_v16  }
  0x81   :  { %40 = vst.msk [vmem:[#allocation0] sm:$0x1] %vm39_vm6, %v38_v17  }
  0x84   :  { %v44_v25 = vpop.permute.xlu0 %43   ;;  %v50_v26 = vpop.permute.xlu1 %49  }
  0x85   :  { %46 = vst.msk [vmem:[#allocation0] sm:$0x1] %vm45_vm7, %v44_v25  }
  0x86   :  { %52 = vst.msk [vmem:[#allocation0] sm:$0x1] %vm51_vm8, %v50_v26  }
  0x87   :  { %58 = vst.msk [vmem:[#allocation0] sm:$0x1] %vm57_vm9, %v56_v18  }
  0x8c   :  { %v62_v27 = vpop.permute.xlu0 %61   ;;  %v68_v28 = vpop.permute.xlu1 %67  }
  0x8d   :  { %64 = vst.msk [vmem:[#allocation0] sm:$0x1] %vm63_vm10, %v62_v27  }
  0x8e   :  { %70 = vst.msk [vmem:[#allocation0] sm:$0x1] %vm69_vm11, %v68_v28  }
  0x8f   :  { %76 = vst.msk [vmem:[#allocation0] sm:$0x1] %vm75_vm12, %v74_v21  }
  0x94   :  { %v80_v29 = vpop.permute.xlu0 %79   ;;  %v86_v30 = vpop.permute.xlu1 %85  }
  0x95   :  { %82 = vst.msk [vmem:[#allocation0] sm:$0x1] %vm81_vm13, %v80_v29  }
  0x96   :  { %88 = vst.msk [vmem:[#allocation0] sm:$0x1] %vm87_vm14, %v86_v30  }
  0x97   :  { %94 = vst.msk [vmem:[#allocation0] sm:$0x1] %vm93_vm15, %v92_v24  }
  0x9e   :  { %v97_v31 = vld [vmem:[#allocation0] sm:$0x1] }
  0x9f   :  { %100 = vst [vmem:[%s208_s1] sm:$0x1] %v97_v31 }

// kernel: tile.29
= control target key start
LH: loop header
LB: loop body
LE: loop exit
PB: predicated region body
PF: predicated region fallthrough
CT: control target
= control target key end

     0   :  { %vm6_vm0 = vcmask 1043458   ;;  %vm10_vm1 = vcmask 1045508   ;;  %vm14_vm2 = vcmask 1047558   ;;  %s19_s6 = smov 3  ;;  %s22_s7 = smov 12  ;;  %vm16_vm3 = vcmask 64512   ;;  %s736_s0 = inlined_call_operand.vmem [shape: f32[8,16,8], index: 0, kind: input, shape index: {}]   ;;  %s737_s1 = inlined_call_operand.vmem [shape: f32[8,128], index: 1, kind: output, shape index: {}]  }
   0x1   :  { %v348_v0 = vld [vmem:[%s736_s0 + $0xf] ss:$16 sm:%s19_s6]   ;;  %s27_s12 = smov 48  ;;  %s32_s13 = smov 192  ;;  %vm38_vm4 = vcmask 1048512   ;;  %vm60_vm5 = vcmask 982912  }
   0x2   :  { %v349_v1 = vld [vmem:[%s736_s0 + $0xf] ss:$16 sm:%s22_s7]   ;;  %s63_s18 = smov 3  ;;  %s66_s21 = smov 12  ;;  %vm82_vm6 = vcmask 917312   ;;  %vm104_vm7 = vcmask 851712  }
   0x3   :  { %v25_v2 = vsel %vm6_vm0, %v349_v1, %v348_v0  ;;  %v350_v3 = vld [vmem:[%s736_s0 + $0xf] ss:$16 sm:%s27_s12]   ;;  %v356_v6 = vld [vmem:[%s736_s0 + $0xd] ss:$16 sm:%s63_s18]   ;;  %s71_s22 = smov 48  ;;  %s76_s27 = smov 192 }
   0x4   :  { %v351_v4 = vld [vmem:[%s736_s0 + $0xf] ss:$16 sm:%s32_s13]   ;;  %v30_v5 = vsel %vm10_vm1, %v350_v3, %v25_v2  ;;  %v357_v8 = vld [vmem:[%s736_s0 + $0xd] ss:$16 sm:%s66_s21]   ;;  %s423_s28 = smov 120   ;;  %s41_s2 = smov 3 }
   0x5   :  { %v35_v7 = vsel %vm14_vm2, %v351_v4, %v30_v5  ;;  %v358_v9 = vld [vmem:[%s736_s0 + $0xd] ss:$16 sm:%s71_s22]   ;;  %v69_v10 = vsel %vm6_vm0, %v357_v8, %v356_v6  ;;  %s44_s3 = smov 12  ;;  %v352_v13 = vld [vmem:[%s736_s0 + $0xe] ss:$16 sm:%s41_s2]   ;;  %s49_s8 = smov 48 }
   0x6   :  { %36 = vrot.lane.b32.xlu0 %v35_v7, %s423_s28  ;;  %v359_v11 = vld [vmem:[%s736_s0 + $0xd] ss:$16 sm:%s76_s27]   ;;  %v74_v12 = vsel %vm10_vm1, %v358_v9, %v69_v10  ;;  %s54_s9 = smov 192  ;;  %s85_s14 = smov 3  ;;  %vm126_vm8 = vcmask 786112   ;;  %vm148_vm9 = vcmask 720512  }
   0x7   :  { %v353_v14 = vld [vmem:[%s736_s0 + $0xe] ss:$16 sm:%s44_s3]   ;;  %v79_v15 = vsel %vm14_vm2, %v359_v11, %v74_v12  ;;  %s424_s15 = smov 104   ;;  %v360_v20 = vld [vmem:[%s736_s0 + $0xc] ss:$16 sm:%s85_s14]   ;;  %s88_s18 = smov 12 }
   0x8   :  { %v47_v16 = vsel %vm6_vm0, %v353_v14, %v352_v13  ;;  %v354_v17 = vld [vmem:[%s736_s0 + $0xe] ss:$16 sm:%s49_s8]   ;;  %80 = vrot.lane.b32.xlu1 %v79_v15, %s424_s15  ;;  %s93_s19 = smov 48  ;;  %s98_s24 = smov 192  ;;  %vm170_vm10 = vcmask 654912   ;;  %vm192_vm11 = vcmask 589312  }
   0x9   :  { %v355_v18 = vld [vmem:[%s736_s0 + $0xe] ss:$16 sm:%s54_s9]   ;;  %v52_v19 = vsel %vm10_vm1, %v354_v17, %v47_v16  ;;  %v361_v21 = vld [vmem:[%s736_s0 + $0xc] ss:$16 sm:%s88_s18]   ;;  %s151_s27 = smov 3  ;;  %s154_s28 = smov 12 }
   0xa   :  { %v362_v22 = vld [vmem:[%s736_s0 + $0xc] ss:$16 sm:%s93_s19]   ;;  %v57_v23 = vsel %vm14_vm2, %v355_v18, %v52_v19  ;;  %v91_v24 = vsel %vm6_vm0, %v361_v21, %v360_v20  ;;  %v372_v27 = vld [vmem:[%s736_s0 + $0x9] ss:$16 sm:%s151_s27]   ;;  %s159_s4 = smov 48  ;;  %s164_s7 = smov 192 }
   0xb   :  { %v363_v25 = vld [vmem:[%s736_s0 + $0xc] ss:$16 sm:%s98_s24]   ;;  %v96_v26 = vsel %vm10_vm1, %v362_v22, %v91_v24  ;;  %v373_v28 = vld [vmem:[%s736_s0 + $0x9] ss:$16 sm:%s154_s28]   ;;  %s173_s8 = smov 3  ;;  %s425_s9 = smov 112  }
   0xc   :  { %v157_v29 = vsel %vm6_vm0, %v373_v28, %v372_v27  ;;  %v374_v30 = vld [vmem:[%s736_s0 + $0x9] ss:$16 sm:%s159_s4]   ;;  %v101_v31 = vsel %vm14_vm2, %v363_v25, %v96_v26  ;;  %v376_v32 = vld [vmem:[%s736_s0 + $0x8] ss:$16 sm:%s173_s8]   ;;  %s176_s12 = smov 12  ;;  %s181_s13 = smov 48 }
   0xd   :  { %v377_v33 = vld [vmem:[%s736_s0 + $0x8] ss:$16 sm:%s176_s12]   ;;  %s186_s16 = smov 192  ;;  %v162_v34 = vsel %vm10_vm1, %v374_v30, %v157_v29  ;;  %v375_v35 = vld [vmem:[%s736_s0 + $0x9] ss:$16 sm:%s164_s7]   ;;  %s217_s21 = smov 3 }
   0xe   :  { %58 = vrot.lane.b32.xlu0 %v57_v23, %s425_s9  ;;  %v179_v36 = vsel %vm6_vm0, %v377_v33, %v376_v32  ;;  %v378_v37 = vld [vmem:[%s736_s0 + $0x8] ss:$16 sm:%s181_s13]   ;;  %s220_s22 = smov 12  ;;  %s426_s23 = smov 96   ;;  %v167_v40 = vsel %vm14_vm2, %v375_v35, %v162_v34  ;;  %vm214_vm12 = vcmask 523712   ;;  %vm236_vm13 = vcmask 458112  }
   0xf   :  { %s225_s24 = smov 48  ;;  %v384_v38 = vld [vmem:[%s736_s0 + $0x6] ss:$16 sm:%s217_s21]   ;;  %s239_s29 = smov 3  ;;  %v184_v41 = vsel %vm10_vm1, %v378_v37, %v179_v36  ;;  %v379_v42 = vld [vmem:[%s736_s0 + $0x8] ss:$16 sm:%s186_s16]  }
  0x10   :  { %102 = vrot.lane.b32.xlu1 %v101_v31, %s426_s23  ;;  %v385_v39 = vld [vmem:[%s736_s0 + $0x6] ss:$16 sm:%s220_s22]   ;;  %s230_s3 = smov 192  ;;  %s242_s4 = smov 12  ;;  %v189_v47 = vsel %vm14_vm2, %v379_v42, %v184_v41  ;;  %vm258_vm14 = vcmask 392512   ;;  %vm280_vm15 = vcmask 326912  }
  0x11   :  { %v386_v43 = vld [vmem:[%s736_s0 + $0x6] ss:$16 sm:%s225_s24]   ;;  %s247_s7 = smov 48  ;;  %v223_v44 = vsel %vm6_vm0, %v385_v39, %v384_v38  ;;  %v388_v45 = vld [vmem:[%s736_s0 + $0x5] ss:$16 sm:%s239_s29]   ;;  %s107_s12 = smov 3 }
  0x12   :  { %v389_v46 = vld [vmem:[%s736_s0 + $0x5] ss:$16 sm:%s242_s4]   ;;  %s110_s13 = smov 12  ;;  %s427_s14 = smov 72   ;;  %v387_v48 = vld [vmem:[%s736_s0 + $0x6] ss:$16 sm:%s230_s3]   ;;  %v228_v52 = vsel %vm10_vm1, %v386_v43, %v223_v44 }
  0x13   :  { %v364_v49 = vld [vmem:[%s736_s0 + $0xb] ss:$16 sm:%s107_s12]   ;;  %s115_s19 = smov 48  ;;  %s120_s20 = smov 192  ;;  %v245_v53 = vsel %vm6_vm0, %v389_v46, %v388_v45  ;;  %v390_v54 = vld [vmem:[%s736_s0 + $0x5] ss:$16 sm:%s247_s7]   ;;  %v233_v61 = vsel %vm14_vm2, %v387_v48, %v228_v52 }
  0x14   :  { %s252_s21 = smov 192  ;;  %v365_v50 = vld [vmem:[%s736_s0 + $0xb] ss:$16 sm:%s110_s13]   ;;  %s283_s26 = smov 3  ;;  %v250_v62 = vsel %vm10_vm1, %v390_v54, %v245_v53 }
  0x15   :  { %v366_v51 = vld [vmem:[%s736_s0 + $0xb] ss:$16 sm:%s115_s19]   ;;  %v113_v55 = vsel %vm6_vm0, %v365_v50, %v364_v49  ;;  %s286_s2 = smov 12  ;;  %s428_s3 = smov 64   ;;  %v396_v59 = vld [vmem:[%s736_s0 + $0x3] ss:$16 sm:%s283_s26]  }
  0x16   :  { %168 = vrot.lane.b32.xlu0 %v167_v40, %s427_s14  ;;  %v367_v56 = vld [vmem:[%s736_s0 + $0xb] ss:$16 sm:%s120_s20]   ;;  %v118_v57 = vsel %vm10_vm1, %v366_v51, %v113_v55  ;;  %s291_s4 = smov 48  ;;  %s305_s9 = smov 3 }
  0x17   :  { %v123_v58 = vsel %vm14_vm2, %v367_v56, %v118_v57  ;;  %v397_v60 = vld [vmem:[%s736_s0 + $0x3] ss:$16 sm:%s286_s2]   ;;  %s308_s10 = smov 12  ;;  %v391_v63 = vld [vmem:[%s736_s0 + $0x5] ss:$16 sm:%s252_s21]   ;;  %s429_s13 = smov 88  }
  0x18   :  { %190 = vrot.lane.b32.xlu1 %v189_v47, %s428_s3  ;;  %124 = vrot.lane.b32.xlu2 %v123_v58, %s429_s13  ;;  %s296_s14 = smov 192  ;;  %s313_s15 = smov 48  ;;  %v398_v0 = vld [vmem:[%s736_s0 + $0x3] ss:$16 sm:%s291_s4]   ;;  %v289_v2 = vsel %vm6_vm0, %v397_v60, %v396_v59  ;;  %v255_v5 = vsel %vm14_vm2, %v391_v63, %v250_v62 }
  0x19   :  { %v400_v1 = vld [vmem:[%s736_s0 + $0x2] ss:$16 sm:%s305_s9]   ;;  %s129_s20 = smov 3  ;;  %s132_s25 = smov 12  ;;  %v399_v6 = vld [vmem:[%s736_s0 + $0x3] ss:$16 sm:%s296_s14]   ;;  %v294_v12 = vsel %vm10_vm1, %v398_v0, %v289_v2 }
  0x1a   :  { %v401_v3 = vld [vmem:[%s736_s0 + $0x2] ss:$16 sm:%s308_s10]   ;;  %v368_v4 = vld [vmem:[%s736_s0 + $0xa] ss:$16 sm:%s129_s20]   ;;  %s137_s26 = smov 48  ;;  %s430_s27 = smov 48   ;;  %v299_v20 = vsel %vm14_vm2, %v399_v6, %v294_v12 }
  0x1b   :  { %v402_v7 = vld [vmem:[%s736_s0 + $0x2] ss:$16 sm:%s313_s15]   ;;  %s318_s3 = smov 192  ;;  %v369_v8 = vld [vmem:[%s736_s0 + $0xa] ss:$16 sm:%s132_s25]   ;;  %s142_s6 = smov 192  ;;  %v311_v13 = vsel %vm6_vm0, %v401_v3, %v400_v1 }
  0x1c   :  { %v135_v9 = vsel %vm6_vm0, %v369_v8, %v368_v4  ;;  %v370_v10 = vld [vmem:[%s736_s0 + $0xa] ss:$16 sm:%s137_s26]   ;;  %s195_s11 = smov 3  ;;  %s198_s12 = smov 12  ;;  %v316_v21 = vsel %vm10_vm1, %v402_v7, %v311_v13  ;;  %v403_v22 = vld [vmem:[%s736_s0 + $0x2] ss:$16 sm:%s318_s3]  }
  0x1d   :  { %v371_v11 = vld [vmem:[%s736_s0 + $0xa] ss:$16 sm:%s142_s6]   ;;  %v140_v14 = vsel %vm10_vm1, %v370_v10, %v135_v9  ;;  %v380_v15 = vld [vmem:[%s736_s0 + $0x7] ss:$16 sm:%s195_s11]   ;;  %s203_s17 = smov 48  ;;  %s431_s18 = smov 40   ;;  %v321_v25 = vsel %vm14_vm2, %v403_v22, %v316_v21 }
  0x1e   :  { %234 = vrot.lane.b32.xlu0 %v233_v61, %s430_s27  ;;  %v381_v16 = vld [vmem:[%s736_s0 + $0x7] ss:$16 sm:%s198_s12]   ;;  %v145_v17 = vsel %vm14_vm2, %v371_v11, %v140_v14  ;;  %s208_s21 = smov 192  ;;  %s432_s24 = smov 80  }
  0x1f   :  { %v201_v18 = vsel %vm6_vm0, %v381_v16, %v380_v15  ;;  %v382_v19 = vld [vmem:[%s736_s0 + $0x7] ss:$16 sm:%s203_s17]   ;;  %s261_s25 = smov 3  ;;  %s264_s26 = smov 12 }
  0x20   :  { %256 = vrot.lane.b32.xlu1 %v255_v5, %s431_s18  ;;  %146 = vrot.lane.b32.xlu2 %v145_v17, %s432_s24  ;;  %v206_v23 = vsel %vm10_vm1, %v382_v19, %v201_v18  ;;  %v383_v24 = vld [vmem:[%s736_s0 + $0x7] ss:$16 sm:%s208_s21]   ;;  %s433_s29 = smov 24   ;;  %s269_s5 = smov 48 }
  0x21   :  { %v392_v26 = vld [vmem:[%s736_s0 + $0x4] ss:$16 sm:%s261_s25]   ;;  %v211_v28 = vsel %vm14_vm2, %v383_v24, %v206_v23  ;;  %s434_s6 = smov 16   ;;  %s274_s9 = smov 192 }
  0x22   :  { %v393_v27 = vld [vmem:[%s736_s0 + $0x4] ss:$16 sm:%s264_s26]   ;;  %s435_s10 = smov 56   ;;  %s327_s11 = smov 3 }
  0x23   :  { %v267_v29 = vsel %vm6_vm0, %v393_v27, %v392_v26  ;;  %v394_v30 = vld [vmem:[%s736_s0 + $0x4] ss:$16 sm:%s269_s5]   ;;  %s330_s12 = smov 12  ;;  %v404_v33 = vld [vmem:[%s736_s0 + $0x1] ss:$16 sm:%s327_s11]   ;;  %s335_s19 = smov 48 }
  0x24   :  { %v272_v31 = vsel %vm10_vm1, %v394_v30, %v267_v29  ;;  %v395_v32 = vld [vmem:[%s736_s0 + $0x4] ss:$16 sm:%s274_s9]   ;;  %v405_v34 = vld [vmem:[%s736_s0 + $0x1] ss:$16 sm:%s330_s12]   ;;  %s340_s22 = smov 192  ;;  %s436_s23 = smov 32  }
  0x25   :  { %v277_v35 = vsel %vm14_vm2, %v395_v32, %v272_v31  ;;  %v333_v36 = vsel %vm6_vm0, %v405_v34, %v404_v33  ;;  %v406_v37 = vld [vmem:[%s736_s0 + $0x1] ss:$16 sm:%s335_s19]   ;;  %s437_s26 = smov 8   ;;  %s2_s27 = smov 3 }
  0x26   :  { %300 = vrot.lane.b32.xlu0 %v299_v20, %s433_s29  ;;  %v338_v38 = vsel %vm10_vm1, %v406_v37, %v333_v36  ;;  %v407_v39 = vld [vmem:[%s736_s0 + $0x1] ss:$16 sm:%s340_s22]   ;;  %s4_s28 = smov 12  ;;  %s8_s29 = smov 48 }
  0x27   :  { %v343_v40 = vsel %vm14_vm2, %v407_v39, %v338_v38  ;;  %s12_s30 = smov 192  ;;  %v3_v41 = vld [vmem:[%s736_s0] ss:$16 sm:%s2_s27]  }
  0x28   :  { %322 = vrot.lane.b32.xlu1 %v321_v25, %s434_s6  ;;  %212 = vrot.lane.b32.xlu2 %v211_v28, %s435_s10  ;;  %v5_v42 = vld [vmem:[%s736_s0] ss:$16 sm:%s4_s28]  }
  0x29   :  { %v7_v43 = vsel %vm6_vm0, %v5_v42, %v3_v41  ;;  %v9_v44 = vld [vmem:[%s736_s0] ss:$16 sm:%s8_s29]   ;;  %vm302_vm0 = vcmask 261312  }
  0x2a   :  { %v11_v45 = vsel %vm10_vm1, %v9_v44, %v7_v43  ;;  %v13_v46 = vld [vmem:[%s736_s0] ss:$16 sm:%s12_s30]   ;;  %vm324_vm1 = vcmask 195712  }
  0x2b   :  { %v15_v47 = vsel %vm14_vm2, %v13_v46, %v11_v45  ;;  %vm346_vm2 = vcmask 130112  }
  0x2c   :  { %17 = vst.msk [vmem:[%s737_s1] sm:$0xff] %vm16_vm3, %v15_v47  }
  0x30   :  { %278 = vrot.lane.b32.xlu2 %v277_v35, %s436_s23 }
  0x38   :  { %344 = vrot.lane.b32.xlu2 %v343_v40, %s437_s26 }
  0x72   :  { %v125_v48 = vpop.permute.xlu2 %124  }
  0x78   :  { %v37_v49 = vpop.permute.xlu0 %36  }
  0x79   :  { %39 = vst.msk [vmem:[%s737_s1] sm:$0xff] %vm38_vm4, %v37_v49  }
  0x7a   :  { %v81_v50 = vpop.permute.xlu1 %80   ;;  %v147_v51 = vpop.permute.xlu2 %146  }
  0x80   :  { %v59_v52 = vpop.permute.xlu0 %58  }
  0x81   :  { %61 = vst.msk [vmem:[%s737_s1] sm:$0xff] %vm60_vm5, %v59_v52  }
  0x82   :  { %83 = vst.msk [vmem:[%s737_s1] sm:$0xff] %vm82_vm6, %v81_v50   ;;  %v103_v53 = vpop.permute.xlu1 %102   ;;  %v213_v54 = vpop.permute.xlu2 %212  }
  0x83   :  { %105 = vst.msk [vmem:[%s737_s1] sm:$0xff] %vm104_vm7, %v103_v53  }
  0x84   :  { %127 = vst.msk [vmem:[%s737_s1] sm:$0xff] %vm126_vm8, %v125_v48  }
  0x85   :  { %149 = vst.msk [vmem:[%s737_s1] sm:$0xff] %vm148_vm9, %v147_v51  }
  0x88   :  { %v169_v55 = vpop.permute.xlu0 %168  }
  0x89   :  { %171 = vst.msk [vmem:[%s737_s1] sm:$0xff] %vm170_vm10, %v169_v55  }
  0x8a   :  { %v191_v56 = vpop.permute.xlu1 %190   ;;  %v279_v57 = vpop.permute.xlu2 %278  }
  0x8b   :  { %193 = vst.msk [vmem:[%s737_s1] sm:$0xff] %vm192_vm11, %v191_v56  }
  0x8c   :  { %215 = vst.msk [vmem:[%s737_s1] sm:$0xff] %vm214_vm12, %v213_v54  }
  0x90   :  { %v235_v58 = vpop.permute.xlu0 %234  }
  0x91   :  { %237 = vst.msk [vmem:[%s737_s1] sm:$0xff] %vm236_vm13, %v235_v58  }
  0x92   :  { %v257_v59 = vpop.permute.xlu1 %256   ;;  %v345_v60 = vpop.permute.xlu2 %344  }
  0x93   :  { %259 = vst.msk [vmem:[%s737_s1] sm:$0xff] %vm258_vm14, %v257_v59  }
  0x94   :  { %281 = vst.msk [vmem:[%s737_s1] sm:$0xff] %vm280_vm15, %v279_v57  }
  0x98   :  { %v301_v61 = vpop.permute.xlu0 %300  }
  0x99   :  { %303 = vst.msk [vmem:[%s737_s1] sm:$0xff] %vm302_vm0, %v301_v61  }
  0x9a   :  { %v323_v62 = vpop.permute.xlu1 %322  }
  0x9b   :  { %325 = vst.msk [vmem:[%s737_s1] sm:$0xff] %vm324_vm1, %v323_v62  }
  0x9c   :  { %347 = vst.msk [vmem:[%s737_s1] sm:$0xff] %vm346_vm2, %v345_v60  }

// kernel: convblock_pallas.1
= control target key start
LH: loop header
LB: loop body
LE: loop exit
PB: predicated region body
PF: predicated region fallthrough
CT: control target
= control target key end

     0   :  { %s1372_s21 = smov 0   ;;  %s1750_s0 = inlined_call_operand.vmem [shape: f32[2,24,128], index: 0, kind: input, shape index: {}]   ;;  %s1751_s1 = inlined_call_operand.vmem [shape: bf16[3,128,128], index: 1, kind: input, shape index: {}]   ;;  %s1752_s2 = inlined_call_operand.vmem [shape: f32[1,128], index: 2, kind: input, shape index: {}]   ;;  %s1753_s3 = inlined_call_operand.vmem [shape: f32[1,128], index: 3, kind: input, shape index: {}]   ;;  %s1754_s4 = inlined_call_operand.vmem [shape: f32[128,8], index: 4, kind: input, shape index: {}]   ;;  %s1755_s5 = inlined_call_operand.vmem [shape: f32[8,128], index: 5, kind: input, shape index: {}]   ;;  %s1756_s6 = inlined_call_operand.vmem [shape: f32[2,16,128], index: 6, kind: output, shape index: {}]  }
   0x1 LB: > { %s1154_s22 = sadd.s32 4294967295, %s1335_s21   ;;  %p1158_p0 = scmp.ge.s32.totalorder %s1335_s21, 1  ;;  %s1335_s21 = sphi %s1372_s21, %s16_s21  }
   0x2   : > { %p212_p1 = scmp.lt.s32.totalorder %s1335_s21, 3 }
   0x4   : > { %p213_p2 = pnand %p1158_p0, %p212_p1 }
   0x5   : > { %p242_p3 = scmp.lt.s32.totalorder (!%p213_p2), %s1154_s22, 1 }
   0x6   : > { %216 = sbr.rel (%p213_p2) target bundleno = 554 (0x22a), region = 44 }
   0xb   : > { %v1308_v0 = vld [vmem:[%s1751_s1 + $0x78] sm:$0xff]  ;;  %v1307_v3 = vld [vmem:[%s1751_s1 + $0x70] sm:$0xff]  ;;  %s1758_s22 = smov (!%p242_p3, %s1154_s22), 1  ;;  %v1306_v6 = vld [vmem:[%s1751_s1 + $0x68] sm:$0xff]  ;;  %vm308_vm3 = vsmask.f32 7424 }
   0xc   : > { %v1300_v1 = vld [vmem:[%s1751_s1 + $0x38] sm:$0xff]  ;;  %370 = vmatpush.bf16.msra.mxu0 %v1308_v0  ;;  %v1299_v4 = vld [vmem:[%s1751_s1 + $0x30] sm:$0xff]  ;;  %s1317_s11 = smul.u32 24, %s1758_s22  ;;  %v1298_v7 = vld [vmem:[%s1751_s1 + $0x28] sm:$0xff]  ;;  %vm464_vm4 = vcmask 1046528   ;;  %vm549_vm5 = vcmask 1040384  }
   0xd   : > { %v1316_v2 = vld [vmem:[%s1751_s1 + $0xb8] sm:$0xff]  ;;  %433 = vmatpush.bf16.msra.mxu1 %v1300_v1  ;;  %v1315_v5 = vld [vmem:[%s1751_s1 + $0xb0] sm:$0xff]  ;;  %v1314_v8 = vld [vmem:[%s1751_s1 + $0xa8] sm:$0xff]  ;;  %vm928_vm9 = vcmask 64512   ;;  %s1292_s25 = sshll.u32 %s1758_s22, 4 }
   0xe   : > { %517 = vmatpush.bf16.msra.mxu2 %v1316_v2  ;;  %s246_s18 = scalar_lea.vmem %s1750_s0, %s1317_s11  ;;  %v1305_v9 = vld [vmem:[%s1751_s1 + $0x60] sm:$0xff]  ;;  %v566_v15 = vld [vmem:[%s1754_s4 + $0x78] sm:$0xff]  ;;  %v565_v19 = vld [vmem:[%s1754_s4 + $0x70] sm:$0xff]  ;;  %s251_s28 = scalar_lea.vmem %s1756_s6, %s1292_s25 }
   0xf   : > { %v1297_v10 = vld [vmem:[%s1751_s1 + $0x20] sm:$0xff]  ;;  %v253_v12 = vld [vmem:[%s246_s18 + $0x8] sm:$0xff]  ;;  %v254_v13 = vld [vmem:[%s246_s18 + $0x10] sm:$0xff]  ;;  %v1422_v18 = vand.u32 4294901760, %v566_v15  ;;  %v1434_v28 = vand.u32 4294901760, %v565_v19 }
  0x10   : > { %371 = vmatpush.bf16.msra.mxu0 %v1307_v3  ;;  %v252_v11 = vld [vmem:[%s246_s18] sm:$0xff]  ;;  %vm256_vm1 = vcmp.gt.f32.partialorder %v253_v12, 0.0  ;;  %vm257_vm2 = vcmp.gt.f32.partialorder %v254_v13, 0.0  ;;  %v259_v16 = vmul.f32 0.01, %v253_v12  ;;  %v564_v25 = vld [vmem:[%s1754_s4 + $0x68] sm:$0xff] }
  0x11   : > { %434 = vmatpush.bf16.msra.mxu1 %v1299_v4  ;;  %vm255_vm0 = vcmp.gt.f32.partialorder %v252_v11, 0.0  ;;  %v258_v14 = vmul.f32 0.01, %v252_v11  ;;  %v260_v17 = vmul.f32 0.01, %v254_v13  ;;  %v1313_v20 = vld [vmem:[%s1751_s1 + $0xa0] sm:$0xff]  ;;  %568 = vmatpush.msra.mxu3 %v1422_v18  ;;  %v1449_v36 = vsub.f32 %v566_v15, %v1422_v18 }
  0x12   : > { %518 = vmatpush.bf16.msra.mxu2 %v1315_v5  ;;  %v262_v22 = vsel %vm256_vm1, %v253_v12, %v259_v16  ;;  %v1304_v29 = vld [vmem:[%s1751_s1 + $0x58] sm:$0xff]  ;;  %v563_v32 = vld [vmem:[%s1754_s4 + $0x60] sm:$0xff]  ;;  %v1451_v37 = vand.u32 4294901760, %v564_v25  ;;  %v1460_v40 = vsub.f32 %v565_v19, %v1434_v28  ;;  %v1303_v42 = vld [vmem:[%s1751_s1 + $0x50] sm:$0xff] }
  0x13   : > { %v261_v21 = vsel %vm255_vm0, %v252_v11, %v258_v14  ;;  %v263_v23 = vsel %vm257_vm2, %v254_v13, %v260_v17  ;;  %v265_v26 = vpack.c.bf16 %v262_v22, %v262_v22  ;;  %v1296_v30 = vld [vmem:[%s1751_s1 + $0x18] sm:$0xff]  ;;  %570 = vmatpush.msra.mxu3 %v1434_v28  ;;  %v1462_v41 = vand.u32 4294901760, %v563_v32  ;;  %v1295_v43 = vld [vmem:[%s1751_s1 + $0x10] sm:$0xff]  ;;  %v560_v51 = vld [vmem:[%s1754_s4 + $0x48] sm:$0xff] }
  0x14   : > { %372 = vmatpush.bf16.msra.mxu0 %v1306_v6  ;;  %v264_v24 = vpack.c.bf16 %v261_v21, %v261_v21  ;;  %v266_v27 = vpack.c.bf16 %v263_v23, %v263_v23  ;;  %v1312_v33 = vld [vmem:[%s1751_s1 + $0x98] sm:$0xff]  ;;  %v561_v45 = vld [vmem:[%s1754_s4 + $0x50] sm:$0xff]  ;;  %v610_v48 = vand.u32 4294901760, %v1449_v36  ;;  %v1485_v50 = vsub.f32 %v564_v25, %v1451_v37  ;;  %v1302_v54 = vld [vmem:[%s1751_s1 + $0x48] sm:$0xff] }
  0x15   : > { %435 = vmatpush.bf16.msra.mxu1 %v1298_v7  ;;  %v304_v34 = vunpack.c.l.b16 %v265_v26  ;;  %v562_v38 = vld [vmem:[%s1754_s4 + $0x58] sm:$0xff]  ;;  %572 = vmatpush.msra.mxu3 %v1451_v37  ;;  %v1311_v46 = vld [vmem:[%s1751_s1 + $0x90] sm:$0xff]  ;;  %v616_v52 = vand.u32 4294901760, %v1460_v40  ;;  %v1491_v53 = vand.u32 4294901760, %v561_v45  ;;  %v1294_v55 = vld [vmem:[%s1751_s1 + $0x8] sm:$0xff]  ;;  %v1503_v59 = vsub.f32 %v563_v32, %v1462_v41 }
  0x16   : > { %519 = vmatpush.bf16.msra.mxu2 %v1314_v8  ;;  %v303_v31 = vunpack.c.l.b16 %v264_v24  ;;  %v305_v35 = vunpack.c.l.b16 %v266_v27  ;;  %v1481_v49 = vand.u32 4294901760, %v562_v38  ;;  %v559_v60 = vld [vmem:[%s1754_s4 + $0x40] sm:$0xff]  ;;  %v1310_v61 = vld [vmem:[%s1751_s1 + $0x88] sm:$0xff]  ;;  %v611_v62 = vsub.f32 %v1449_v36, %v610_v48  ;;  %v558_v2 = vld [vmem:[%s1754_s4 + $0x38] sm:$0xff] }
  0x17   : > { %574 = vmatpush.msra.mxu3 %v1462_v41  ;;  %v1514_v63 = vand.u32 4294901760, %v560_v51  ;;  %v622_v0 = vand.u32 4294901760, %v1485_v50  ;;  %v617_v3 = vsub.f32 %v1460_v40, %v616_v52  ;;  %v1527_v4 = vand.u32 4294901760, %v559_v60  ;;  %v1301_v5 = vld [vmem:[%s1751_s1 + $0x40] sm:$0xff] }
  0x18   : > { %373 = vmatpush.bf16.msra.mxu0 %v1305_v9  ;;  %v1457_v39 = vpack.c.b16 %v304_v34, %v303_v31  ;;  %v1471_v44 = vpack.c.b16 %v305_v35, %v305_v35  ;;  %v1519_v1 = vsub.f32 %v562_v38, %v1481_v49  ;;  %v1293_v6 = vld [vmem:[%s1751_s1] sm:$0xff]  ;;  %v628_v9 = vand.u32 4294901760, %v1503_v59 }
  0x19   : > { %436 = vmatpush.bf16.msra.mxu1 %v1297_v10  ;;  %576 = vmatpush.msra.mxu3 %v1481_v49  ;;  %v1538_v10 = vsub.f32 %v561_v45, %v1491_v53  ;;  %v1309_v11 = vld [vmem:[%s1751_s1 + $0x80] sm:$0xff]  ;;  %v612_v14 = vand.u32 4294901760, %v611_v62  ;;  %v1545_v15 = vand.u32 4294901760, %v558_v2  ;;  %v623_v16 = vsub.f32 %v1485_v50, %v622_v0  ;;  %v554_v62 = vld [vmem:[%s1754_s4 + $0x18] sm:$0xff] }
  0x1a   : > { %520 = vmatpush.bf16.msra.mxu2 %v1313_v20  ;;  %v312_v47 = vshll.u32 %v1457_v39, 16  ;;  %v310_v56 = vshrl.u32 %v1457_v39, 16  ;;  %v317_v58 = vshll.u32 %v1471_v44, 16  ;;  %v465_v12 = vrot.slane %v1457_v39, 1 }
  0x1b   : > { %578 = vmatpush.msra.mxu3 %v1491_v53  ;;  %v466_v13 = vrot.slane %v1471_v44, 1  ;;  %v634_v17 = vand.u32 4294901760, %v1519_v1  ;;  %v1553_v19 = vsub.f32 %v560_v51, %v1514_v63  ;;  %v618_v20 = vand.u32 4294901760, %v617_v3 }
  0x1c   : > { %374 = vmatpush.bf16.msra.mxu0 %v1304_v29  ;;  %v314_v57 = vrot.slane %v312_v47, 1  ;;  %v319_v8 = vrot.slane %v317_v58, 1  ;;  %v629_v22 = vsub.f32 %v1503_v59, %v628_v9  ;;  %v640_v23 = vand.u32 4294901760, %v1538_v10  ;;  %v557_v47 = vld [vmem:[%s1754_s4 + $0x30] sm:$0xff] }
  0x1d   : > { %437 = vmatpush.bf16.msra.mxu1 %v1296_v30  ;;  %580 = vmatpush.msra.mxu3 %v1514_v63  ;;  %v1562_v24 = vsub.f32 %v559_v60, %v1527_v4  ;;  %v467_v25 = vsel %vm464_vm4, %v465_v12, %v466_v13  ;;  %v624_v26 = vand.u32 4294901760, %v623_v16  ;;  %v635_v27 = vsub.f32 %v1519_v1, %v634_v17  ;;  %v552_v16 = vld [vmem:[%s1754_s4 + $0x8] sm:$0xff] }
  0x1e   : > { %521 = vmatpush.bf16.msra.mxu2 %v1312_v33  ;;  %v315_v7 = vor.u32 %v314_v57, %v310_v56  ;;  %v646_v29 = vand.u32 4294901760, %v1553_v19  ;;  %v1569_v30 = vsub.f32 %v558_v2, %v1545_v15  ;;  %v630_v31 = vand.u32 4294901760, %v629_v22  ;;  %v555_v57 = vld [vmem:[%s1754_s4 + $0x20] sm:$0xff] }
  0x1f   : > { %582 = vmatpush.msra.mxu3 %v1527_v4  ;;  %v641_v32 = vsub.f32 %v1538_v10, %v640_v23  ;;  %v652_v33 = vand.u32 4294901760, %v1562_v24  ;;  %v636_v34 = vand.u32 4294901760, %v635_v27  ;;  %v1607_v51 = vand.u32 4294901760, %v557_v47  ;;  %v551_v27 = vld [vmem:[%s1754_s4] sm:$0xff] }
  0x20   : > { %375 = vmatpush.bf16.msra.mxu0 %v1303_v42  ;;  %v320_v21 = vsel %vm308_vm3, %v315_v7, %v319_v8  ;;  %v647_v35 = vsub.f32 %v1553_v19, %v646_v29  ;;  %v658_v38 = vand.u32 4294901760, %v1569_v30  ;;  %v553_v7 = vld [vmem:[%s1754_s4 + $0x10] sm:$0xff] }
  0x21   : > { %438 = vmatpush.bf16.msra.mxu1 %v1295_v43  ;;  %584 = vmatpush.msra.mxu3 %v1545_v15  ;;  %v653_v42 = vsub.f32 %v1562_v24, %v652_v33 }
  0x22   : > { %522 = vmatpush.bf16.msra.mxu2 %v1311_v46  ;;  %v648_v43 = vand.u32 4294901760, %v647_v35  ;;  %v659_v44 = vsub.f32 %v1569_v30, %v658_v38  ;;  %v597_v35 = vand.u32 4294901760, %v551_v27 }
  0x23   : > { %v654_v45 = vand.u32 4294901760, %v653_v42  ;;  %586 = vmatpush.msra.mxu3 %v1607_v51 }
  0x24   : > { %376 = vmatpush.bf16.msra.mxu0 %v1302_v54  ;;  %v660_v46 = vand.u32 4294901760, %v659_v44  ;;  %v556_v54 = vld [vmem:[%s1754_s4 + $0x28] sm:$0xff]  ;;  %v699_v44 = vsub.f32 %v551_v27, %v597_v35 }
  0x25   : > { %439 = vmatpush.bf16.msra.mxu1 %v1294_v55  ;;  %v1613_v55 = vsub.f32 %v557_v47, %v1607_v51  ;;  %v1615_v56 = vand.u32 4294901760, %v556_v54 }
  0x26   : > { %523 = vmatpush.bf16.msra.mxu2 %v1310_v61  ;;  %v1626_v61 = vand.u32 4294901760, %v555_v57  ;;  %v700_v47 = vand.u32 4294901760, %v699_v44 }
  0x27   : > { %v664_v58 = vand.u32 4294901760, %v1613_v55  ;;  %v1624_v60 = vsub.f32 %v556_v54, %v1615_v56  ;;  %588 = vmatpush.msra.mxu3 %v1615_v56 }
  0x28   : > { %377 = vmatpush.bf16.msra.mxu0 %v1301_v5  ;;  %v1639_v5 = vsub.f32 %v555_v57, %v1626_v61 }
  0x29   : > { %440 = vmatpush.bf16.msra.mxu1 %v1293_v6  ;;  %v665_v2 = vsub.f32 %v1613_v55, %v664_v58  ;;  %v670_v3 = vand.u32 4294901760, %v1624_v60  ;;  %v1641_v6 = vand.u32 4294901760, %v554_v62  ;;  %590 = vmatpush.msra.mxu3 %v1626_v61 }
  0x2a   : > { %524 = vmatpush.bf16.msra.mxu2 %v1309_v11  ;;  %v676_v12 = vand.u32 4294901760, %v1639_v5 }
  0x2b   : > { %378 = vmatmul.bf16.vlgmr.msra.gmra.mxu0 %v320_v21  ;;  %v666_v8 = vand.u32 4294901760, %v665_v2  ;;  %v671_v11 = vsub.f32 %v1624_v60, %v670_v3  ;;  %v1654_v13 = vsub.f32 %v554_v62, %v1641_v6  ;;  %592 = vmatpush.msra.mxu3 %v1641_v6  ;;  %v701_v62 = vsub.f32 %v699_v44, %v700_v47 }
  0x2c   : > { %613 = vmatpush.msrb.mxu0 %v612_v14  ;;  %441 = vmatmul.bf16.vlgmr.msra.gmra.mxu1 %v1457_v39  ;;  %v642_v39 = vand.u32 4294901760, %v641_v32  ;;  %v1658_v14 = vand.u32 4294901760, %v553_v7  ;;  %v677_v21 = vsub.f32 %v1639_v5, %v676_v12 }
  0x2d   : > { %711 = vmatpush.msrb.mxu1 %v1449_v36  ;;  %525 = vmatmul.bf16.vlgmr.msra.gmra.mxu2 %v467_v25  ;;  %v682_v22 = vand.u32 4294901760, %v1654_v13  ;;  %v1668_v25 = vand.u32 4294901760, %v552_v16  ;;  %v702_v2 = vand.u32 4294901760, %v701_v62 }
  0x2e   : > { %764 = vmatpush.msrb.mxu2 %v1422_v18  ;;  %619 = vmatpush.msrb.mxu0 %v618_v20  ;;  %v672_v20 = vand.u32 4294901760, %v671_v11 }
  0x2f   : > { %714 = vmatpush.msrb.mxu1 %v1460_v40  ;;  %594 = vmatpush.msra.mxu3 %v1658_v14  ;;  %v683_v32 = vsub.f32 %v1654_v13, %v682_v22 }
  0x30   : > { %766 = vmatpush.msrb.mxu2 %v1434_v28  ;;  %625 = vmatpush.msrb.mxu0 %v624_v26  ;;  %v687_v26 = vsub.f32 %v553_v7, %v1658_v14 }
  0x31   : > { %717 = vmatpush.msrb.mxu1 %v1485_v50  ;;  %596 = vmatpush.msra.mxu3 %v1668_v25  ;;  %v684_v42 = vand.u32 4294901760, %v683_v32 }
  0x32   : > { %768 = vmatpush.msrb.mxu2 %v1451_v37  ;;  %631 = vmatpush.msrb.mxu0 %v630_v31  ;;  %v678_v31 = vand.u32 4294901760, %v677_v21 }
  0x33   : > { %720 = vmatpush.msrb.mxu1 %v1503_v59  ;;  %598 = vmatpush.msra.mxu3 %v597_v35 }
  0x34   : > { %770 = vmatpush.msrb.mxu2 %v1462_v41  ;;  %637 = vmatpush.msrb.mxu0 %v636_v34  ;;  %v693_v34 = vsub.f32 %v552_v16, %v1668_v25 }
  0x35   : > { %723 = vmatpush.msrb.mxu1 %v1519_v1  ;;  %805 = vmatpush.msrb.mxu3 %v610_v48 }
  0x36   : > { %772 = vmatpush.msrb.mxu2 %v1481_v49  ;;  %643 = vmatpush.msrb.mxu0 %v642_v39  ;;  %v688_v39 = vand.u32 4294901760, %v687_v26 }
  0x37   : > { %726 = vmatpush.msrb.mxu1 %v1538_v10  ;;  %809 = vmatpush.msrb.mxu3 %v616_v52 }
  0x38   : > { %774 = vmatpush.msrb.mxu2 %v1491_v53  ;;  %649 = vmatpush.msrb.mxu0 %v648_v43  ;;  %v694_v43 = vand.u32 4294901760, %v693_v34 }
  0x39   : > { %729 = vmatpush.msrb.mxu1 %v1553_v19  ;;  %813 = vmatpush.msrb.mxu3 %v622_v0 }
  0x3a   : > { %776 = vmatpush.msrb.mxu2 %v1514_v63  ;;  %655 = vmatpush.msrb.mxu0 %v654_v45  ;;  %v689_v45 = vsub.f32 %v687_v26, %v688_v39 }
  0x3b   : > { %732 = vmatpush.msrb.mxu1 %v1562_v24  ;;  %817 = vmatpush.msrb.mxu3 %v628_v9 }
  0x3c   : > { %778 = vmatpush.msrb.mxu2 %v1527_v4  ;;  %661 = vmatpush.msrb.mxu0 %v660_v46  ;;  %v695_v46 = vsub.f32 %v693_v34, %v694_v43  ;;  %v690_v54 = vand.u32 4294901760, %v689_v45 }
  0x3d   : > { %735 = vmatpush.msrb.mxu1 %v1569_v30  ;;  %821 = vmatpush.msrb.mxu3 %v634_v17 }
  0x3e   : > { %780 = vmatpush.msrb.mxu2 %v1545_v15  ;;  %667 = vmatpush.msrb.mxu0 %v666_v8  ;;  %v696_v57 = vand.u32 4294901760, %v695_v46  ;;  %v927_v8 = vld [vmem:[%s1755_s5] sm:$0xff] }
  0x3f   : > { %738 = vmatpush.msrb.mxu1 %v1613_v55  ;;  %825 = vmatpush.msrb.mxu3 %v640_v23  ;;  %v947_v11 = vand.u32 4294901760, %v927_v8 }
  0x40   : > { %782 = vmatpush.msrb.mxu2 %v1607_v51  ;;  %673 = vmatpush.msrb.mxu0 %v672_v20 }
  0x41   : > { %741 = vmatpush.msrb.mxu1 %v1624_v60  ;;  %829 = vmatpush.msrb.mxu3 %v646_v29 }
  0x42   : > { %784 = vmatpush.msrb.mxu2 %v1615_v56  ;;  %679 = vmatpush.msrb.mxu0 %v678_v31 }
  0x43   : > { %744 = vmatpush.msrb.mxu1 %v1639_v5  ;;  %833 = vmatpush.msrb.mxu3 %v652_v33 }
  0x44   : > { %786 = vmatpush.msrb.mxu2 %v1626_v61  ;;  %685 = vmatpush.msrb.mxu0 %v684_v42 }
  0x45   : > { %747 = vmatpush.msrb.mxu1 %v1654_v13  ;;  %837 = vmatpush.msrb.mxu3 %v658_v38  ;;  %v974_v13 = vsub.f32 %v927_v8, %v947_v11 }
  0x46   : > { %788 = vmatpush.msrb.mxu2 %v1641_v6  ;;  %691 = vmatpush.msrb.mxu0 %v690_v54 }
  0x47   : > { %750 = vmatpush.msrb.mxu1 %v687_v26  ;;  %841 = vmatpush.msrb.mxu3 %v664_v58  ;;  %v975_v20 = vand.u32 4294901760, %v974_v13 }
  0x48   : > { %790 = vmatpush.msrb.mxu2 %v1658_v14  ;;  %697 = vmatpush.msrb.mxu0 %v696_v57 }
  0x49   : > { %753 = vmatpush.msrb.mxu1 %v693_v34  ;;  %845 = vmatpush.msrb.mxu3 %v670_v3 }
  0x4a   : > { %792 = vmatpush.msrb.mxu2 %v1668_v25  ;;  %703 = vmatpush.msrb.mxu0 %v702_v2 }
  0x4b   : > { %756 = vmatpush.msrb.mxu1 %v699_v44  ;;  %849 = vmatpush.msrb.mxu3 %v676_v12 }
  0x4c   : > { %794 = vmatpush.msrb.mxu2 %v597_v35  ;;  %872 = vmatpush.msra.mxu0 %v1422_v18 }
  0x4d   : > { %853 = vmatpush.msrb.mxu3 %v682_v22  ;;  %948 = vmatpush.msra.mxu1 %v947_v11 }
  0x4e   : > { %874 = vmatpush.msra.mxu0 %v1434_v28 }
  0x4f   : > { %857 = vmatpush.msrb.mxu3 %v688_v39 }
  0x50   : > { %876 = vmatpush.msra.mxu0 %v1451_v37 }
  0x51   : > { %861 = vmatpush.msrb.mxu3 %v694_v43 }
  0x52   : > { %878 = vmatpush.msra.mxu0 %v1462_v41 }
  0x53   : > { %865 = vmatpush.msrb.mxu3 %v700_v47 }
  0x54   : > { %880 = vmatpush.msra.mxu0 %v1481_v49 }
  0x56   : > { %882 = vmatpush.msra.mxu0 %v1491_v53 }
  0x58   : > { %884 = vmatpush.msra.mxu0 %v1514_v63 }
  0x5a   : > { %886 = vmatpush.msra.mxu0 %v1527_v4 }
  0x5c   : > { %888 = vmatpush.msra.mxu0 %v1545_v15 }
  0x5e   : > { %890 = vmatpush.msra.mxu0 %v1607_v51 }
  0x60   : > { %892 = vmatpush.msra.mxu0 %v1615_v56 }
  0x62   : > { %894 = vmatpush.msra.mxu0 %v1626_v61 }
  0x64   : > { %896 = vmatpush.msra.mxu0 %v1641_v6 }
  0x66   : > { %898 = vmatpush.msra.mxu0 %v1658_v14 }
  0x68   : > { %900 = vmatpush.msra.mxu0 %v1668_v25  ;;  %v976_v25 = vsub.f32 %v974_v13, %v975_v20 }
  0x6a   : > { %902 = vmatpush.msra.mxu0 %v597_v35  ;;  %v977_v27 = vand.u32 4294901760, %v976_v25 }
  0x6c   : > { %978 = vmatpush.msra.mxu2 %v977_v27 }
  0xa8   : > { %v379_v18 = vpop.f32.mrf.mxu0 }
  0xa9   : > { %v442_v28 = vpop.f32.mrf.mxu1 }
  0xaa   : > { %v443_v37 = vadd.f32 %v442_v28, %v379_v18 }
  0xb0   : > { %v526_v36 = vpop.f32.mrf.mxu2  ;;  %v381_v40 = vpop.f32.mrf.mxu0 }
  0xb1   : > { %v444_v41 = vpop.f32.mrf.mxu1  ;;  %v1720_v48 = vadd.f32 %v526_v36, %v443_v37 }
  0xb2   : > { %v445_v49 = vadd.f32 %v444_v41, %v381_v40 }
  0xb3   : > { %v540_v53 = vmul.f32 %v1720_v48, %v1720_v48 }
  0xb8   : > { %v528_v50 = vpop.f32.mrf.mxu2 }
  0xb9   : > { %v1722_v52 = vadd.f32 %v528_v50, %v445_v49 }
  0xbb   : > { %v533_v59 = vadd.f32 %v1722_v52, %v1720_v48  ;;  %v541_v63 = vmul.f32 %v1722_v52, %v1722_v52 }
  0xbd   : > { %v534_v0 = vrot.slane %v533_v59, 4  ;;  %v542_v1 = vadd.f32 %v541_v63, %v540_v53 }
  0xbf   : > { %v535_v4 = vadd.f32 %v534_v0, %v533_v59  ;;  %v543_v9 = vrot.slane %v542_v1, 4 }
  0xc1   : > { %v536_v10 = vrot.slane %v535_v4, 2  ;;  %v544_v15 = vadd.f32 %v543_v9, %v542_v1  ;;  %v1326_v9 = vld [vmem:[%s1752_s2] ss:$0 sm:$0xff] }
  0xc3   : > { %v537_v17 = vadd.f32 %v536_v10, %v535_v4  ;;  %v545_v19 = vrot.slane %v544_v15, 2 }
  0xc5   : > { %v538_v23 = vrot.slane %v537_v17, 1  ;;  %v546_v24 = vadd.f32 %v545_v19, %v544_v15 }
  0xc7   : > { %v547_v29 = vrot.slane %v546_v24, 1  ;;  %v539_v30 = vadd.f32 %v538_v23, %v537_v17  ;;  %v1083_v23 = vld [vmem:[%s1753_s3] sm:$0x1] }
  0xc9   : > { %v548_v33 = vadd.f32 %v547_v29, %v546_v24 }
  0xcb   : > { %v550_v38 = vsel %vm549_vm5, %v539_v30, %v548_v33 }
  0xcc   : > { %v599_v51 = vand.u32 4294901760, %v550_v38 }
  0xce   : > { %705 = vmatmul.f32.vlgmr.msrb.gmra.mxu0 %v599_v51  ;;  %v600_v55 = vsub.f32 %v550_v38, %v599_v51 }
  0xd0   : > { %759 = vmatmul.f32.vlgmr.msrb.gmra.mxu1 %v600_v55  ;;  %v601_v56 = vand.u32 4294901760, %v600_v55 }
  0xd1   : > { %1024 = vmatpush.msrb.mxu1 %v947_v11 }
  0xd2   : > { %798 = vmatmul.f32.vlgmr.msrb.gmra.mxu2 %v601_v56  ;;  %v602_v58 = vsub.f32 %v600_v55, %v601_v56 }
  0xd3   : > { %1050 = vmatpush.msrb.mxu2 %v975_v20 }
  0xd4   : > { %v603_v60 = vand.u32 4294901760, %v602_v58 }
  0xd6   : > { %604 = vmatmul.f32.vlgmr.msra.gmra.mxu3 %v603_v60  ;;  %904 = vmatmul.f32.vlgmr.msra.gmra.mxu0 %v599_v51 }
  0xd7   : > { %1001 = vmatpush.msra.mxu3 %v974_v13 }
  0xde   : > { %867 = vmatmul.f32.vlgmr.msrb.gmra.mxu3 %v599_v51 }
  0xdf   : > { %1072 = vmatpush.msrb.mxu3 %v947_v11 }
 0x14b   : > { %v706_v61 = vpop.f32.mrf.mxu0 }
 0x14d   : > { %v760_v6 = vpop.f32.mrf.mxu1 }
 0x153   : > { %v905_v22 = vpop.f32.mrf.mxu0 }
 0x155   : > { %v799_v12 = vpop.f32.mrf.mxu2 }
 0x159   : > { %v605_v3 = vpop.f32.mrf.mxu3 }
 0x15a   : > { %v707_v5 = vadd.f32 %v706_v61, %v605_v3 }
 0x15c   : > { %v761_v7 = vadd.f32 %v760_v6, %v707_v5 }
 0x15e   : > { %v800_v14 = vadd.f32 %v799_v12, %v761_v7 }
 0x161   : > { %v868_v16 = vpop.f32.mrf.mxu3 }
 0x162   : > { %v869_v21 = vadd.f32 %v868_v16, %v800_v14 }
 0x164   : > { %v906_v26 = vadd.f32 %v905_v22, %v869_v21 }
 0x166   : > { %v908_v31 = vmul.f32 0.00390625, %v906_v26 }
 0x168   : > { %v909_v32 = vmul.f32 %v908_v31, %v908_v31 }
 0x16a   : > { %v911_v34 = vrot.slane %v909_v32, 7 }
 0x16c   : > { %v913_v35 = vsub.f32 %v908_v31, %v911_v34 }
 0x16e   : > { %v914_v39 = vmax.f32 %v913_v35, 0.0 }
 0x170   : > { %v915_v42 = vadd.f32 1e-05, %v914_v39 }
 0x172   : > { %1327 = vrsqrt.f32 %v915_v42  ;;  %vm922_vm7 = vweird.f32 %v915_v42 }
 0x178   : > { %v1328_v43 = vpop.eup %1327 }
 0x179   : > { %v917_v44 = vmul.f32 %v1328_v43, %v915_v42  ;;  %vm923_vm6 = vweird.f32 %v1328_v43 }
 0x17a   : > { %vm924_vm8 = vmor %vm922_vm7, %vm923_vm6 }
 0x17b   : > { %v918_v45 = vmul.f32 %v1328_v43, %v917_v44 }
 0x17d   : > { %v919_v46 = vmul.f32 0.5, %v918_v45 }
 0x17f   : > { %v920_v47 = vsub.f32 1.5, %v919_v46 }
 0x181   : > { %v921_v54 = vmul.f32 %v1328_v43, %v920_v47 }
 0x183   : > { %v925_v57 = vsel %vm924_vm8, %v1328_v43, %v921_v54 }
 0x184   : > { %v926_v62 = vsel %vm549_vm5, %v908_v31, %v925_v57 }
 0x185   : > { %v930_v2 = vsel %vm928_vm9, %v926_v62, 0 }
 0x186   : > { %v949_v18 = vand.u32 4294901760, %v930_v2 }
 0x188   : > { %980 = vmatmul.f32.vlgmr.msra.gmra.mxu2 %v949_v18  ;;  %v950_v28 = vsub.f32 %v930_v2, %v949_v18 }
 0x18a   : > { %1004 = vmatmul.f32.vlgmr.msra.gmra.mxu3 %v950_v28  ;;  %v951_v36 = vand.u32 4294901760, %v950_v28 }
 0x18c   : > { %v952_v37 = vsub.f32 %v950_v28, %v951_v36 }
 0x18e   : > { %v953_v40 = vand.u32 4294901760, %v952_v37 }
 0x190   : > { %954 = vmatmul.f32.vlgmr.msra.gmra.mxu1 %v953_v40  ;;  %1052 = vmatmul.f32.vlgmr.msrb.gmra.mxu2 %v949_v18 }
 0x192   : > { %1074 = vmatmul.f32.vlgmr.msrb.gmra.mxu3 %v949_v18 }
 0x198   : > { %1028 = vmatmul.f32.vlgmr.msrb.gmra.mxu1 %v951_v36 }
 0x20b   : > { %v981_v41 = vpop.f32.mrf.mxu2 }
 0x20d   : > { %v955_v49 = vpop.f32.mrf.mxu1  ;;  %v1005_v50 = vpop.f32.mrf.mxu3 }
 0x20e   : > { %v982_v53 = vadd.f32 %v981_v41, %v955_v49 }
 0x210   : > { %v1006_v59 = vadd.f32 %v1005_v50, %v982_v53 }
 0x213   : > { %v1053_v1 = vpop.f32.mrf.mxu2 }
 0x215   : > { %v1029_v63 = vpop.f32.mrf.mxu1  ;;  %v1075_v10 = vpop.f32.mrf.mxu3 }
 0x216   : > { %v1030_v0 = vadd.f32 %v1029_v63, %v1006_v59 }
 0x218   : > { %v1054_v4 = vadd.f32 %v1053_v1, %v1030_v0 }
 0x21a   : > { %v1076_v15 = vadd.f32 %v1075_v10, %v1054_v4 }
 0x21c   : > { %v1082_v17 = vmul.f32 %v1326_v9, %v1076_v15 }
 0x21e   : > { %v1085_v19 = vrot.slane %v1082_v17, 1  ;;  %v1089_v29 = vperm.slane %v1082_v17, 1 }
 0x220   : > { %v1087_v24 = vmul.f32 %v1085_v19, %v1076_v15  ;;  %v1090_v33 = vmul.f32 %v1089_v29, %v1720_v48  ;;  %v1091_v38 = vmul.f32 %v1089_v29, %v1722_v52 }
 0x222   : > { %v1088_v30 = vsub.f32 %v1083_v23, %v1087_v24 }
 0x224   : > { %v1093_v51 = vperm.slane %v1088_v30, 0 }
 0x226   : > { %v1095_v55 = vadd.f32 %v1093_v51, %v1090_v33  ;;  %v1096_v56 = vadd.f32 %v1093_v51, %v1091_v38 }
 0x228   : > { %1097 = vst [vmem:[%s251_s28] sm:$0xff] %v1095_v55 }
 0x229   : > { %1098 = vst [vmem:[%s251_s28 + $0x8] sm:$0xff] %v1096_v56 }
 0x22a PF: > { %s16_s21 = sadd.s32 1, %s1335_s21  }
 0x22b   : > { %p13_p4 = scmp.ge.s32.totalorder %s16_s21, 4  }
 0x22d   :  { %15 = sbr.rel (!%p13_p4) target bundleno = 1 (0x1), region = 76 }

</bundles_post_ra>
